<compile_context>
chip_gen: v7x
topology: tpu7x:2x2x1
jax: 0.10.0
libtpu: 0.0.40
codegen_flags: <defaults>
</compile_context>

<pallas_src>
import functools

import jax
import jax.numpy as jnp
from jax import lax
from jax.experimental import pallas as pl
from jax.experimental.pallas import tpu as pltpu


def make_positional_embedding(max_sentence_length: int, embedding_size: int):
    """Deterministic buffer, identical math to the PyTorch __init__."""
    pos = jnp.arange(max_sentence_length, dtype=jnp.float32)[:, None]          # (L, 1)
    two_j = jnp.floor(jnp.arange(embedding_size, dtype=jnp.float32) / 2.0) * 2.0
    angles = pos / (10000.0 ** (two_j / float(embedding_size)))                # (L, E)
    pe = jnp.zeros((max_sentence_length, embedding_size), jnp.float32)
    pe = pe.at[:, 0::2].set(jnp.sin(angles[:, 0::2]))
    pe = pe.at[:, 1::2].set(jnp.cos(angles[:, 1::2]))
    return pe                                                                  # (L, E)


def _pe_kernel(seed_ref, x_ref, pe_ref, o_ref, *, p, training):
    # x_ref / o_ref / pe_ref: (1, tR, L) tiles (L is the lane dim, 128 when possible).
    y = x_ref[...].astype(jnp.float32) + pe_ref[...]

    if training and p > 0.0:
        tR = x_ref.shape[1]
        L = x_ref.shape[2]
        b = pl.program_id(0)
        t = pl.program_id(1)
        rows_padded = pl.num_programs(1) * tR

        # Unique global element index for every (batch, row, lane) position.
        rows = lax.broadcasted_iota(jnp.int32, (1, tR, L), 1)
        lanes = lax.broadcasted_iota(jnp.int32, (1, tR, L), 2)
        idx = (b * rows_padded + t * tR + rows) * L + lanes

        # Stateless avalanche hash (plain VPU int ops -> lowers everywhere).
        h = idx * jnp.int32(0x27D4EB2D) + seed_ref[0]
        h = (lax.shift_right_logical(h, 16) ^ h) * jnp.int32(0x045D9F3B)
        h = (lax.shift_right_logical(h, 16) ^ h) * jnp.int32(0x045D9F3B)
        h = lax.shift_right_logical(h, 16) ^ h
        u = (h & jnp.int32(0x00FFFFFF)).astype(jnp.float32) * jnp.float32(1.0 / (1 << 24))

        # Inverted dropout, fused mask-and-scale in one select.
        y = jnp.where(u >= p, y * jnp.float32(1.0 / (1.0 - p)), jnp.float32(0.0))
        # TODO(synk): dropout matches torch.nn.Dropout only in distribution (stateless
        # hash RNG), not bit-for-bit with PyTorch's RNG stream.

    o_ref[...] = y.astype(o_ref.dtype)


def og_positional_encoder(x, pos_emb, *, dropout_p=0.1, training=False, seed=0):
    """x: (B, S, E); pos_emb: (max_len, E) float32; returns (B, S, E) in x.dtype."""
    B, S, E = x.shape
    pe = pos_emb[:S, :].astype(jnp.float32)            # (S, E)

    # Lane-dense view: fold (S, E) into rows of 128 lanes when possible so stores
    # are full-width; otherwise fall back to tiling the sequence axis directly.
    n = S * E
    if n % 128 == 0:
        L, R = 128, n // 128
    else:
        L, R = E, S
    x3 = x.reshape(B, R, L)
    pe3 = pe.reshape(1, R, L)

    # ~2 MiB blocks (rows multiple of 16 so bf16 inputs stay sublane-aligned).
    target_block_bytes = 2 * 1024 * 1024
    rows_fit = max(16, (target_block_bytes // (L * x.dtype.itemsize)) // 16 * 16)
    tR = R if R <= rows_fit else rows_fit
    num_t = pl.cdiv(R, tR)

    kernel = functools.partial(_pe_kernel, p=float(dropout_p), training=bool(training))

    out = pl.pallas_call(
        kernel,
        out_shape=jax.ShapeDtypeStruct((B, R, L), x.dtype),
        grid_spec=pltpu.PrefetchScalarGridSpec(
            num_scalar_prefetch=1,                      # seed lands in SMEM
            grid=(B, num_t),
            in_specs=[
                pl.BlockSpec((1, tR, L), lambda b, t, seed: (b, t, 0)),
                pl.BlockSpec((1, tR, L), lambda b, t, seed: (0, t, 0)),
            ],
            out_specs=pl.BlockSpec((1, tR, L), lambda b, t, seed: (b, t, 0)),
        ),
        compiler_params=pltpu.CompilerParams(
            dimension_semantics=("parallel", "parallel"),
            vmem_limit_bytes=32 * 1024 * 1024,
        ),
        # TODO(synk): input_output_aliases={1: 0} would let XLA reuse x's buffer, but is
        # omitted so callers (and this test) can still read x afterwards.
    )(jnp.array([seed], dtype=jnp.int32), x3, pe3)

    return out.reshape(B, S, E)


if __name__ == "__main__":
    # Small shapes consistent with the module: batch=2, seq=8, embed=32, max_len=16.
    B, S, E = 2, 8, 32
    MAX_LEN = 16
    P = 0.1

    key = jax.random.PRNGKey(0)
    x = jax.random.normal(key, (B, S, E), dtype=jnp.float32)

    pos_emb = make_positional_embedding(MAX_LEN, E)
    ref = x + pos_emb[None, :S, :]

    # Eval mode (dropout is identity) -- exact against the reference.
    out_eval = og_positional_encoder(x, pos_emb, dropout_p=P, training=False)
    out_eval = jax.block_until_ready(out_eval)
    assert out_eval.shape == (B, S, E)
    assert jnp.allclose(out_eval, ref, atol=1e-6, rtol=1e-6), "eval mismatch vs reference"

    # Training mode: every output element must be either 0 (dropped) or the
    # reference value scaled by 1/(1-p) (kept).
    out_train = og_positional_encoder(x, pos_emb, dropout_p=P, training=True, seed=123)
    out_train = jax.block_until_ready(out_train)
    assert out_train.shape == (B, S, E)
    assert bool(jnp.all(jnp.isfinite(out_train)))
    ref_scaled = ref * (1.0 / (1.0 - P))
    recon = jnp.where(out_train == 0.0, ref_scaled, out_train)
    assert jnp.allclose(recon, ref_scaled, atol=1e-5, rtol=1e-5), "train values mismatch"
    drop_frac = float(jnp.mean((out_train == 0.0).astype(jnp.float32)))
    assert 0.0 < drop_frac < 0.35, f"implausible drop fraction {drop_frac}"

    print("KERNEL_OK")
</pallas_src>

<mosaic_0001>
module attributes {stable_mosaic.version = 11 : i64} {
  func.func @_pe_kernel(%arg0: i32, %arg1: i32, %arg2: memref<1xi32, #tpu.memory_space<smem>>, %arg3: memref<1x2x128xf32, #tpu.memory_space<vmem>>, %arg4: memref<1x2x128xf32, #tpu.memory_space<vmem>>, %arg5: memref<1x2x128xf32, #tpu.memory_space<vmem>>) attributes {dimension_semantics = [#tpu.dimension_semantics<parallel>, #tpu.dimension_semantics<parallel>], iteration_bounds = array<i64: 2, 1>, scalar_prefetch = 1 : i64, scratch_operands = 0 : i64, tpu.core_type = #tpu.core_type<tc>, window_params = [{transform_indices = @transform_0, window_bounds = array<i64: 1, 2, 128>}, {transform_indices = @transform_1, window_bounds = array<i64: 1, 2, 128>}, {transform_indices = @transform_2, window_bounds = array<i64: 1, 2, 128>}]} {
    %c0 = arith.constant 0 : index
    %c0_0 = arith.constant 0 : index
    %c0_1 = arith.constant 0 : index
    %0 = vector.load %arg3[%c0, %c0_0, %c0_1] : memref<1x2x128xf32, #tpu.memory_space<vmem>>, vector<1x2x128xf32>
    %c0_2 = arith.constant 0 : index
    %c0_3 = arith.constant 0 : index
    %c0_4 = arith.constant 0 : index
    %1 = vector.load %arg4[%c0_2, %c0_3, %c0_4] : memref<1x2x128xf32, #tpu.memory_space<vmem>>, vector<1x2x128xf32>
    %2 = arith.addf %0, %1 : vector<1x2x128xf32>
    %c0_5 = arith.constant 0 : index
    %c0_6 = arith.constant 0 : index
    %c0_7 = arith.constant 0 : index
    %3 = vector.load %arg5[%c0_5, %c0_6, %c0_7] : memref<1x2x128xf32, #tpu.memory_space<vmem>>, vector<1x2x128xf32>
    tpu.vector_store %arg5[%c0_5, %c0_6, %c0_7], %2 {strides = array<i32>} : memref<1x2x128xf32, #tpu.memory_space<vmem>>, vector<1x2x128xf32>,
    return
  }
  func.func @transform_0(%arg0: i32, %arg1: i32, %arg2: memref<1xi32, #tpu.memory_space<smem>>) -> (i32, i32, i32) {
    %c0_i32 = arith.constant 0 : i32
    %c0_i32_0 = arith.constant 0 : i32
    return %arg0, %arg1, %c0_i32 : i32, i32, i32
  }
  func.func @transform_1(%arg0: i32, %arg1: i32, %arg2: memref<1xi32, #tpu.memory_space<smem>>) -> (i32, i32, i32) {
    %c0_i32 = arith.constant 0 : i32
    %c0_i32_0 = arith.constant 0 : i32
    %c0_i32_1 = arith.constant 0 : i32
    return %c0_i32, %arg1, %c0_i32_0 : i32, i32, i32
  }
  func.func @transform_2(%arg0: i32, %arg1: i32, %arg2: memref<1xi32, #tpu.memory_space<smem>>) -> (i32, i32, i32) {
    %c0_i32 = arith.constant 0 : i32
    %c0_i32_0 = arith.constant 0 : i32
    return %arg0, %arg1, %c0_i32 : i32, i32, i32
  }
}

</mosaic_0001>

<bundles_post_ra>
// kernel: tpu_custom_call.1
= control target key start
LH: loop header
LB: loop body
LE: loop exit
PB: predicated region body
PF: predicated region fallthrough
CT: control target
= control target key end

     0   :  { %9 = vsyncpa [#allocation5], 0  ;;  %s696_s0 = inlined_call_operand.<no memory space> [shape: s32[1], index: 0, kind: input, shape index: {}]   ;;  %s697_s1 = inlined_call_operand.hbm [shape: f32[2,2,128], index: 1, kind: input, shape index: {}]   ;;  %s698_s2 = inlined_call_operand.vmem [shape: f32[1,2,128], index: 2, kind: input, shape index: {}]   ;;  %s699_s3 = inlined_call_operand.hbm [shape: f32[2,2,128], index: 3, kind: output, shape index: {}]  }
   0x1   :  { %11 = vsyncpa [#allocation5 + $0x1], 0 }
   0x2   :  { %12 = vsyncpa [#allocation6], 0 }
   0x3   :  { %14 = vsyncpa [#allocation6 + $0x1], 0  ;;  %s521_s12 = smov 0   ;;  %s523_s13 = smov 0  }
   0x4   :  { %s525_s14 = smov 0   ;;  %s527_s0 = smov 0  }
   0x5   :  { %s529_s15 = smov 0   ;;  %s531_s16 = smov 0  }
   0x6 LB: > { %s309_s17 = sadd.s32 4294967295, %s497_s16   ;;  %s310_s18 = sadd.s32 4294967294, %s497_s16   ;;  %s497_s16 = sphi %s531_s16, %s20_s16   ;;  %s493_s15 = sphi %s529_s15, %s715_s15   ;;  %s489_s0 = sphi %s527_s0, %s714_s0   ;;  %s485_s14 = sphi %s525_s14, %s713_s14   ;;  %s481_s13 = sphi %s523_s13, %s712_s13   ;;  %s477_s12 = sphi %s521_s12, %s711_s12  }
   0x7   : > { %s32_s19 = sadd.s32 1, %s493_s15  ;;  %s41_s20 = sadd.s32 1, %s485_s14 }
   0x8   : > { %p34_p0 = scmp.ge.s32.totalorder %s32_s19, 2  ;;  %p48_p1 = scmp.ne.s32.totalorder %s485_s14, %s481_s13 }
   0x9   : > { %p49_p2 = scmp.eq.s32.totalorder %s497_s16, 0  ;;  %p54_p3 = scmp.ne.s32.totalorder %s481_s13, %s477_s12 }
   0xa   : > { %s717_s19 = smov (%p34_p0, %s32_s19), 0  ;;  %p55_p5 = scmp.eq.s32.totalorder %s309_s17, 0 }
   0xb   : > { %p562_p4 = por %p49_p2, %p48_p1  ;;  %s36_s22 = ssub.s32 %s493_s15, %s717_s19 }
   0xc   : > { %p106_p6 = scmp.eq.s32.totalorder %s309_s17, 1  ;;  %p39_p7 = scmp.eq.s32.totalorder %s36_s22, 0 }
   0xd   : > { %p568_p8 = por %p55_p5, %p54_p3  ;;  %p112_p10 = scmp.eq.s32.totalorder %s310_s18, 1 }
   0xe   : > { %p572_p9 = por %p106_p6, %p48_p1  ;;  %p335_p13 = scmp.lt.s32.totalorder %s497_s16, 2 }
   0xf   : > { %s577_s25 = scalar_select %p39_p7, %s485_s14, %s41_s20  }
  0x10   : > { %s703_s24 = scalar_select %p572_p9, 1, 0 }
  0x11   : > { %p579_p11 = por %p112_p10, %p54_p3  ;;  %s139_s27 = sand.u32 1, %s485_s14  }
  0x12   : > { %s314_s28 = sshll.u32 %s139_s27, 1  ;;  %s315_s29 = sshll.u32 %s493_s15, 5 }
  0x13   : > { %s704_s26 = scalar_select %p579_p11, 1, 0 }
  0x14   : > { %s590_s5 = scalar_lea.hbm %s697_s1, %s315_s29  ;;  %s143_s6 = scalar_lea.vmem [#allocation4], %s314_s28 }
  0x15   : > { %s151_s7 = sshll.u32 %s143_s6, 4  ;;  %p596_p0 = pnand %p335_p13, %p562_p4  ;;  %s592_s7 = int_to_ptr.vmem [resolvable:$true] %s151_s7 }
  0x16   : > { %s140_s9 = scalar_lea.sflag [#allocation5], %s139_s27  ;;  %s385_s10 = scalar_lea.hbm %s590_s5, 32 }
  0x17   : > { %p386_p3 = scmp.ne.s32.totalorder %s590_s5, %s385_s10  ;;  %p387_p5 = pneg %p596_p0 }
  0x18   : > { %s390_s18 = scalar_lea.hbm %s697_s1, 64  ;;  %p391_p4 = scmp.lt.u32.totalorder %s590_s5, %s697_s1 }
  0x19   : > { %p388_p6 = pnand %p387_p5, %p386_p3  ;;  %p392_p10 = scmp.lt.u32.totalorder %s390_s18, %s385_s10 }
  0x1a   : > { %p394_p12 = scmp.lt.u32.totalorder %s385_s10, %s590_s5 }
  0x1b   : > { %p389_p7 = pneg %p388_p6  ;;  %p393_p13 = por %p392_p10, %p391_p4 }
  0x1d   : > { %p395_p1 = por %p394_p12, %p393_p13 }
  0x1f   : > { %p396_p2 = pnand %p395_p1, %p389_p7 }
  0x21   : > { %399 = shalt.err (!%p396_p2)
}
  0x22   : > { %s400_s22 = scalar_lea.vmem %s592_s7, 32  ;;  %s499_s27 = smov [#allocation4]  }
  0x23   : > { %p401_p3 = scmp.ne.s32.totalorder %s592_s7, %s400_s22  ;;  %s405_s28 = sshll.u32 %s499_s27, 4  ;;  %s406_s28 = int_to_ptr.vmem [resolvable:$false] %s405_s28 }
  0x24   : > { %s407_s29 = scalar_lea.vmem %s406_s28, 64  ;;  %p408_p9 = scmp.lt.s32.totalorder %s592_s7, %s406_s28 }
  0x25   : > { %p403_p6 = pnand %p401_p3, %p387_p5  ;;  %p409_p4 = scmp.lt.s32.totalorder %s407_s29, %s400_s22 }
  0x27   : > { %p404_p11 = pneg %p403_p6  ;;  %p410_p10 = por %p409_p4, %p408_p9 }
  0x29   : > { %p411_p12 = pnand %p410_p10, %p404_p11 }
  0x2b   : > { %414 = shalt.err (!%p411_p12)
}
  0x2c   : > { %330 = dma.hbm_to_vmem [thread:$0]  (!%p596_p0), %s590_s5, 32, %s592_s7, %s140_s9  }
  0x2d   : > { %p706_p1 = scmp.lt.s32.totalorder %s497_s16, 3  ;;  %p707_p2 = scmp.ge.s32.totalorder %s497_s16, 1 }
  0x2f   : > { %p157_p5 = pnand %p707_p2, %p706_p1 }
  0x30   : > { %s632_s30 = sand.u32 (!%p157_p5), 1, %s481_s13  }
  0x31   : > { %160 = sbr.rel (%p157_p5) target bundleno = 83 (0x53), region = 28  ;;  %s317_s4 = sshll.u32 (!%p157_p5), %s632_s30, 1 }
  0x32   : > { %s163_s6 = scalar_lea.sflag (!%p157_p5), [#allocation5], %s632_s30  ;;  %s166_s10 = scalar_lea.vmem (!%p157_p5), [#allocation4], %s317_s4 }
  0x38   : > { %468 = dma.done.wait (%p568_p8), %s163_s6, 32  }
  0x39   : > { %470 = vsyncadd (%p568_p8), %s163_s6, 4294967264  ;;  %s190_s5 = scalar_lea.vmem [#allocation7], %s317_s4  ;;  %s320_s8 = sshll.u32 %s489_s0, 5  ;;  %v195_v0 = vld [vmem:[%s166_s10] sm:$0x3] }
  0x3a   : > { %s214_s7 = sshll.u32 %s190_s5, 4  ;;  %v196_v1 = vld [vmem:[%s698_s2] sm:$0x3]  ;;  %s649_s23 = scalar_lea.hbm %s699_s3, %s320_s8  ;;  %s644_s7 = int_to_ptr.vmem [resolvable:$true] %s214_s7 }
  0x3b   : > { %v197_v2 = vadd.f32 %v196_v1, %v195_v0  ;;  %s200_s20 = scalar_lea.sflag [#allocation6], %s632_s30  ;;  %s415_s21 = scalar_lea.vmem %s644_s7, 32 }
  0x3c   : > { %p416_p8 = scmp.ne.s32.totalorder %s644_s7, %s415_s21  ;;  %p708_p9 = scmp.ne.s32.totalorder %s703_s24, 0 }
  0x3d   : > { %198 = vst [vmem:[%s190_s5] sm:$0x3] %v197_v2  ;;  %s500_s0 = smov [#allocation7]  }
  0x3e   : > { %p417_p11 = pnand %p416_p8, %p708_p9  ;;  %s419_s22 = sshll.u32 %s500_s0, 4  ;;  %s420_s22 = int_to_ptr.vmem [resolvable:$false] %s419_s22 }
  0x3f   : > { %s421_s27 = scalar_lea.vmem %s420_s22, 64  ;;  %p422_p7 = scmp.lt.s32.totalorder %s644_s7, %s420_s22 }
  0x40   : > { %p418_p0 = pneg %p417_p11  ;;  %p423_p13 = scmp.lt.s32.totalorder %s421_s27, %s415_s21 }
  0x42   : > { %p424_p3 = por %p423_p13, %p422_p7 }
  0x44   : > { %p425_p6 = pnand %p424_p3, %p418_p0 }
  0x46   : > { %428 = shalt.err (!%p425_p6)
}
  0x47   : > { %s429_s28 = scalar_lea.hbm %s649_s23, 32  ;;  %s433_s4 = scalar_lea.hbm %s699_s3, 64 }
  0x48   : > { %p430_p4 = scmp.ne.s32.totalorder %s649_s23, %s429_s28  ;;  %p434_p1 = scmp.lt.u32.totalorder %s649_s23, %s699_s3 }
  0x49   : > { %p435_p2 = scmp.lt.u32.totalorder %s433_s4, %s429_s28  ;;  %p437_p8 = scmp.lt.u32.totalorder %s429_s28, %s649_s23 }
  0x4a   : > { %p431_p10 = pnand %p430_p4, %p708_p9 }
  0x4b   : > { %p436_p5 = por %p435_p2, %p434_p1 }
  0x4c   : > { %p432_p12 = pneg %p431_p10 }
  0x4d   : > { %p438_p11 = por %p437_p8, %p436_p5 }
  0x4f   : > { %p439_p0 = pnand %p438_p11, %p432_p12 }
  0x51   : > { %442 = shalt.err (!%p439_p0)
}
  0x52   : > { %325 = dma.vmem_to_hbm [thread:$0]  (%p708_p9), %s644_s7, 32, %s649_s23, %s200_s20  }
  0x53 PF: > { %s226_s5 = sand.u32 1, %s477_s12   ;;  %p709_p7 = scmp.ne.s32.totalorder %s704_s26, 0 }
  0x54   : > { %p710_p13 = scmp.ge.s32.totalorder %s497_s16, 2  ;;  %s227_s8 = scalar_lea.sflag [#allocation6], %s226_s5 }
  0x56   : > { %p332_p3 = pnand %p710_p13, %p709_p7 }
  0x58   : > { %472 = dma.done.wait (!%p332_p3), %s227_s8, 32  }
  0x59   : > { %474 = vsyncadd (!%p332_p3), %s227_s8, 4294967264  ;;  %s20_s16 = sadd.s32 1, %s497_s16   ;;  %s711_s12 = smov %s481_s13 }
  0x5a   : > { %p17_p6 = scmp.ge.s32.totalorder %s20_s16, 4   ;;  %s712_s13 = smov %s485_s14 }
  0x5b   : > { %s713_s14 = smov %s577_s25  ;;  %s714_s0 = smov %s493_s15 }
  0x5c   : > { %s715_s15 = smov %s717_s19  ;;  %19 = sbr.rel (!%p17_p6) target bundleno = 6 (0x6), region = 76 }
  0x63   :  { %232 = vsyncpa [#allocation5], 1 }
  0x64   :  { %234 = vsyncpa [#allocation5 + $0x1], 1 }
  0x65   :  { %235 = vsyncpa [#allocation6], 1 }
  0x66   :  { %237 = vsyncpa [#allocation6 + $0x1], 1 }

</bundles_post_ra>
